<compile_context>
chip_gen: v5e
topology: v5e:2x2
jax: 0.10.0
libtpu: 0.0.40
codegen_flags: <defaults>
</compile_context>

<pallas_src>
import math
import functools

import jax
import jax.numpy as jnp
from jax.experimental import pallas as pl
from jax.experimental.pallas import tpu as pltpu


def _layernorm_kernel(x_ref, alpha_ref, bias_ref, o_ref, *, eps, hidden):
    """o = alpha * (x - mean) / (std + eps) + bias, per row (last-dim norm)."""
    x = x_ref[...].astype(jnp.float32)                         # (tm, H)
    mean = jnp.mean(x, axis=-1, keepdims=True)                 # (tm, 1)
    centered = x - mean
    # PyTorch x.std(dim=-1) uses Bessel's correction (divide by H - 1).
    # Guard hidden == 1 (would divide by zero); matches torch (std -> nan otherwise,
    # here we just avoid the 0 denominator).
    n = max(hidden - 1, 1)
    var = jnp.sum(centered * centered, axis=-1, keepdims=True) * (1.0 / n)
    d = jnp.sqrt(var) + eps                                    # (tm, 1)
    # EUP approximate reciprocal on the (tm,1) vector + one Newton-Raphson step
    # (also only (tm,1) work) -> ~full f32 precision, no full-tile divide.
    inv = pl.reciprocal(d, approx=True)
    inv = inv * (2.0 - d * inv)
    y = (centered * inv) * alpha_ref[...].astype(jnp.float32) \
        + bias_ref[...].astype(jnp.float32)
    o_ref[...] = y.astype(o_ref.dtype)


def _pick_tm(M, H, itemsize):
    """Dtype/VMEM-aware row-tile size.

    Per tile row the VMEM footprint is roughly:
      double-buffered input block  : 2 * H * itemsize
      double-buffered output block : 2 * H * itemsize
      ~3 tile-sized f32 temporaries: 3 * H * 4      (upcast copy, centered, product)
    Budget ~40 MiB keeps comfortable headroom inside v7x's 64 MiB VMEM while still
    giving large tiles on v5e/v6e (128 MiB).
    """
    bytes_per_row = H * (4 * itemsize + 12)
    budget = 40 * 1024 * 1024
    tm = int(budget // max(bytes_per_row, 1))
    tm = max(8, min(tm, 1024))
    tm = (tm // 8) * 8
    # Keep >= ~4 row tiles so the "parallel" axis can shard across both v7x
    # TensorCores (per-step overhead ~0.35 us is negligible for this kernel).
    if M >= 64:
        quarter = -(-M // 4)                 # ceil(M / 4)
        quarter = ((quarter + 7) // 8) * 8   # round up to sublane multiple
        tm = min(tm, max(8, quarter))
    if tm >= M:
        tm = M                               # single full-extent block (layout-legal)
    return tm


def layer_normalization(x, alpha, bias, *, eps=1e-6, tm=None):
    """Pallas equivalent of the PyTorch LayerNormalization.forward.

    x:     [..., hidden]
    alpha: [hidden]
    bias:  [hidden]
    returns same shape/dtype as x.
    """
    orig_shape = x.shape
    H = orig_shape[-1]
    M = int(math.prod(orig_shape[:-1])) if len(orig_shape) > 1 else 1
    x2d = x.reshape(M, H)
    alpha2d = alpha.reshape(1, H)
    bias2d = bias.reshape(1, H)

    itemsize = jnp.dtype(x.dtype).itemsize
    if tm is None:
        tm = _pick_tm(M, H, itemsize)

    num_tiles = pl.cdiv(M, tm)   # partial last block handled by Pallas masking

    cost = pl.CostEstimate(
        flops=7 * M * H,
        transcendentals=2 * M,   # one sqrt + one reciprocal per row
        bytes_accessed=2 * M * H * itemsize + 2 * H * jnp.dtype(alpha.dtype).itemsize,
    )

    out2d = pl.pallas_call(
        functools.partial(_layernorm_kernel, eps=eps, hidden=H),
        out_shape=jax.ShapeDtypeStruct((M, H), x.dtype),
        grid_spec=pltpu.PrefetchScalarGridSpec(
            num_scalar_prefetch=0,
            grid=(num_tiles,),
            in_specs=[
                pl.BlockSpec((tm, H), lambda i: (i, 0)),   # x rows (pipelined)
                pl.BlockSpec((1, H), lambda i: (0, 0)),    # alpha (resident)
                pl.BlockSpec((1, H), lambda i: (0, 0)),    # bias (resident)
            ],
            out_specs=pl.BlockSpec((tm, H), lambda i: (i, 0)),
        ),
        compiler_params=pltpu.CompilerParams(
            dimension_semantics=("parallel",),        # rows independent -> megacore
            vmem_limit_bytes=48 * 1024 * 1024,        # < v7x 64 MiB physical VMEM
        ),
        cost_estimate=cost,
    )(x2d, alpha2d, bias2d)

    return out2d.reshape(orig_shape)


if __name__ == "__main__":
    # Small shapes consistent with the module's forward: x = [batch, seq, hidden]
    batch, seq, hidden = 2, 8, 32
    eps = 1e-6

    key = jax.random.PRNGKey(0)
    kx, ka, kb = jax.random.split(key, 3)

    x = jax.random.normal(kx, (batch, seq, hidden), dtype=jnp.float32)
    # Module initializes alpha=ones, bias=zeros; use random values here to also
    # exercise the learned-parameter broadcast path (forward semantics identical).
    alpha = 1.0 + 0.1 * jax.random.normal(ka, (hidden,), dtype=jnp.float32)
    bias = 0.1 * jax.random.normal(kb, (hidden,), dtype=jnp.float32)

    out = layer_normalization(x, alpha, bias, eps=eps)
    out = jax.block_until_ready(out)

    # Reference: same math as the PyTorch module (unbiased std, eps added to std).
    mean = jnp.mean(x, axis=-1, keepdims=True)
    std = jnp.std(x, axis=-1, keepdims=True, ddof=1)
    ref = alpha * (x - mean) / (std + eps) + bias

    assert out.shape == x.shape
    assert jnp.allclose(out, ref, atol=2e-5, rtol=2e-5), float(
        jnp.max(jnp.abs(out - ref))
    )

    print("KERNEL_OK")
</pallas_src>

<mosaic_0001>
module attributes {stable_mosaic.version = 11 : i64} {
  func.func @_layernorm_kernel(%arg0: i32, %arg1: memref<16x32xf32, #tpu.memory_space<vmem>>, %arg2: memref<1x32xf32, #tpu.memory_space<vmem>>, %arg3: memref<1x32xf32, #tpu.memory_space<vmem>>, %arg4: memref<16x32xf32, #tpu.memory_space<vmem>>) attributes {dimension_semantics = [#tpu.dimension_semantics<parallel>], iteration_bounds = array<i64: 1>, scalar_prefetch = 0 : i64, scratch_operands = 0 : i64, tpu.core_type = #tpu.core_type<tc>, window_params = [{transform_indices = @transform_0, window_bounds = array<i64: 16, 32>}, {pipeline_mode = #tpu.pipeline_mode<synchronous>, transform_indices = @transform_1, window_bounds = array<i64: 1, 32>}, {pipeline_mode = #tpu.pipeline_mode<synchronous>, transform_indices = @transform_2, window_bounds = array<i64: 1, 32>}, {transform_indices = @transform_3, window_bounds = array<i64: 16, 32>}]} {
    %c0 = arith.constant 0 : index
    %c0_0 = arith.constant 0 : index
    %0 = vector.load %arg1[%c0, %c0_0] : memref<16x32xf32, #tpu.memory_space<vmem>>, vector<16x32xf32>
    %cst = arith.constant dense<0.000000e+00> : vector<16xf32>
    %1 = vector.multi_reduction <add>, %0, %cst [1] : vector<16x32xf32> to vector<16xf32>
    %2 = vector.shape_cast %1 : vector<16xf32> to vector<16x1xf32>
    %cst_1 = arith.constant 3.200000e+01 : f32
    %3 = vector.broadcast %cst_1 : f32 to vector<16x1xf32>
    %4 = arith.divf %2, %3 : vector<16x1xf32>
    %5 = vector.broadcast %4 : vector<16x1xf32> to vector<16x32xf32>
    %6 = arith.subf %0, %5 : vector<16x32xf32>
    %7 = arith.mulf %6, %6 : vector<16x32xf32>
    %cst_2 = arith.constant dense<0.000000e+00> : vector<16xf32>
    %8 = vector.multi_reduction <add>, %7, %cst_2 [1] : vector<16x32xf32> to vector<16xf32>
    %9 = vector.shape_cast %8 : vector<16xf32> to vector<16x1xf32>
    %cst_3 = arith.constant 0.0322580636 : f32
    %10 = vector.broadcast %cst_3 : f32 to vector<16x1xf32>
    %11 = arith.mulf %9, %10 : vector<16x1xf32>
    %12 = math.sqrt %11 : vector<16x1xf32>
    %cst_4 = arith.constant 9.99999997E-7 : f32
    %13 = vector.broadcast %cst_4 : f32 to vector<16x1xf32>
    %14 = arith.addf %12, %13 : vector<16x1xf32>
    %15 = tpu.reciprocal %14 {approx = true} : vector<16x1xf32> -> vector<16x1xf32>
    %16 = arith.mulf %14, %15 : vector<16x1xf32>
    %cst_5 = arith.constant 2.000000e+00 : f32
    %17 = vector.broadcast %cst_5 : f32 to vector<16x1xf32>
    %18 = arith.subf %17, %16 : vector<16x1xf32>
    %19 = arith.mulf %15, %18 : vector<16x1xf32>
    %20 = vector.broadcast %19 : vector<16x1xf32> to vector<16x32xf32>
    %21 = arith.mulf %6, %20 : vector<16x32xf32>
    %c0_6 = arith.constant 0 : index
    %c0_7 = arith.constant 0 : index
    %22 = vector.load %arg2[%c0_6, %c0_7] : memref<1x32xf32, #tpu.memory_space<vmem>>, vector<1x32xf32>
    %23 = vector.broadcast %22 : vector<1x32xf32> to vector<16x32xf32>
    %24 = arith.mulf %21, %23 : vector<16x32xf32>
    %c0_8 = arith.constant 0 : index
    %c0_9 = arith.constant 0 : index
    %25 = vector.load %arg3[%c0_8, %c0_9] : memref<1x32xf32, #tpu.memory_space<vmem>>, vector<1x32xf32>
    %26 = vector.broadcast %25 : vector<1x32xf32> to vector<16x32xf32>
    %27 = arith.addf %24, %26 : vector<16x32xf32>
    %c0_10 = arith.constant 0 : index
    %c0_11 = arith.constant 0 : index
    %28 = vector.load %arg4[%c0_10, %c0_11] : memref<16x32xf32, #tpu.memory_space<vmem>>, vector<16x32xf32>
    tpu.vector_store %arg4[%c0_10, %c0_11], %27 {strides = array<i32>} : memref<16x32xf32, #tpu.memory_space<vmem>>, vector<16x32xf32>,
    return
  }
  func.func @transform_0(%arg0: i32) -> (i32, i32) {
    %c0_i32 = arith.constant 0 : i32
    %c0_i32_0 = arith.constant 0 : i32
    return %arg0, %c0_i32 : i32, i32
  }
  func.func @transform_1(%arg0: i32) -> (i32, i32) {
    %c0_i32 = arith.constant 0 : i32
    %c0_i32_0 = arith.constant 0 : i32
    %c0_i32_1 = arith.constant 0 : i32
    return %c0_i32, %c0_i32_0 : i32, i32
  }
  func.func @transform_2(%arg0: i32) -> (i32, i32) {
    %c0_i32 = arith.constant 0 : i32
    %c0_i32_0 = arith.constant 0 : i32
    %c0_i32_1 = arith.constant 0 : i32
    return %c0_i32, %c0_i32_0 : i32, i32
  }
  func.func @transform_3(%arg0: i32) -> (i32, i32) {
    %c0_i32 = arith.constant 0 : i32
    %c0_i32_0 = arith.constant 0 : i32
    return %arg0, %c0_i32 : i32, i32
  }
}

</mosaic_0001>

<bundles_post_ra>
// kernel: tpu_custom_call.1
= control target key start
LH: loop header
LB: loop body
LE: loop exit
PB: predicated region body
PF: predicated region fallthrough
CT: control target
= control target key end

     0   :  { %8 = vsyncpa [#allocation3], 0  ;;  %s291_s0 = inlined_call_operand.hbm [shape: f32[16,32], index: 0, kind: input, shape index: {}]   ;;  %s292_s1 = inlined_call_operand.hbm [shape: f32[1,32], index: 1, kind: input, shape index: {}]   ;;  %s293_s2 = inlined_call_operand.vmem [shape: f32[1,32], index: 2, kind: input, shape index: {}]   ;;  %s294_s3 = inlined_call_operand.hbm [shape: f32[16,32], index: 3, kind: output, shape index: {}]  }
   0x1   :  { %9 = vsyncpa [#allocation6], 0 }
   0x2   :  { %10 = vsyncpa [#allocation4], 0  ;;  %s15_s14 = sshll.u32 %s291_s0, 4  ;;  %s241_s15 = smov [#allocation2]   ;;  %s16_s14 = int_to_ptr.hbm [resolvable:$true] %s15_s14 }
   0x3   :  { %s17_s16 = sshll.u32 %s241_s15, 4  ;;  %s29_s19 = sshll.u32 %s292_s1, 4  ;;  %s18_s16 = int_to_ptr.vmem [resolvable:$true] %s17_s16  ;;  %s30_s19 = int_to_ptr.hbm [resolvable:$true] %s29_s19 }
   0x4   :  { %s242_s20 = smov 128   ;;  %s243_s21 = smov 8  }
   0x5   :  { %23 = dma.hbm_to_vmem [thread:$0]  %s16_s14, 256, %s18_s16, [#allocation3], %s242_s20, %s242_s20, %s243_s21  }
   0x6   :  { %s244_s22 = smov [#allocation5]  }
   0x7   :  { %s31_s23 = sshll.u32 %s244_s22, 4  ;;  %s32_s23 = int_to_ptr.vmem [resolvable:$true] %s31_s23 }
   0x8   :  { %34 = dma.hbm_to_vmem [thread:$0]  %s30_s19, 16, %s32_s23, [#allocation6]  }
   0x9   :  { %235 = dma.done.wait [#allocation3], 256  }
   0xa   :  { %236 = vsyncadd [#allocation3], 4294967040 }
   0xb   :  { %237 = dma.done.wait [#allocation6], 16  }
   0xc   :  { %238 = vsyncadd [#allocation6], 4294967280  ;;  %vm47_vm0 = vcmask 261120   ;;  %v45_v0 = vld [vmem:[#allocation2] sm:$0xff]  ;;  %v46_v2 = vld [vmem:[#allocation2 + $0x8] sm:$0xff]  ;;  %v245_v4 = vmov 32.0  }
   0xd   :  { %v48_v1 = vsel %vm47_vm0, %v45_v0, 0.0  ;;  %v51_v3 = vsel %vm47_vm0, %v46_v2, 0.0  ;;  %153 = vrcp.f32 %v245_v4  ;;  %v151_v51 = vld [vmem:[#allocation5] ss:$0 sm:$0xff]  ;;  %v152_v53 = vld [vmem:[%s293_s2] ss:$0 sm:$0xff] }
   0xe   :  { %49 = vadd.xlane.f32.xlu0 %v48_v1  ;;  %s246_s24 = smov [#allocation7]   ;;  %s131_s28 = sshll.u32 %s294_s3, 4  ;;  %s132_s28 = int_to_ptr.hbm [resolvable:$true] %s131_s28 }
   0xf   :  { %s129_s25 = sshll.u32 %s246_s24, 4  ;;  %s130_s25 = int_to_ptr.vmem [resolvable:$true] %s129_s25 }
  0x13   :  { %v154_v5 = vpop.eup %153 }
  0x14   :  { %v55_v6 = vmul.f32 32.0, %v154_v5  ;;  %vm59_vm1 = vweird.f32 %v154_v5 }
  0x16   :  { %52 = vadd.xlane.f32.xlu0 %v51_v3  ;;  %v56_v7 = vsub.f32 1.0, %v55_v6 }
  0x18   :  { %v57_v8 = vmul.f32 %v154_v5, %v56_v7 }
  0x1a   :  { %v58_v9 = vadd.f32 %v154_v5, %v57_v8 }
  0x1c   :  { %v60_v10 = vsel %vm59_vm1, %v154_v5, %v58_v9 }
  0x81   :  { %v50_v11 = vpop.xlane.xlu0 %49 }
  0x82   :  { %v61_v12 = vmul.f32 %v60_v10, %v50_v11 }
  0x84   :  { %v63_v13 = vsub.f32 %v45_v0, %v61_v12 }
  0x86   :  { %v65_v14 = vmul.f32 %v63_v13, %v63_v13 }
  0x88   :  { %v67_v15 = vsel %vm47_vm0, %v65_v14, 0.0 }
  0x89   :  { %68 = vadd.xlane.f32.xlu1 %v67_v15  ;;  %v53_v16 = vpop.xlane.xlu0 %52 }
  0x8a   :  { %v62_v17 = vmul.f32 %v60_v10, %v53_v16 }
  0x8c   :  { %v64_v18 = vsub.f32 %v46_v2, %v62_v17 }
  0x8e   :  { %v66_v19 = vmul.f32 %v64_v18, %v64_v18 }
  0x90   :  { %v70_v20 = vsel %vm47_vm0, %v66_v19, 0.0 }
  0x91   :  { %71 = vadd.xlane.f32.xlu1 %v70_v20 }
  0xfc   :  { %v69_v21 = vpop.xlane.xlu1 %68 }
  0xfd   :  { %v73_v22 = vmul.f32 0.032258064, %v69_v21 }
  0xff   :  { %155 = vrsqrt.f32 %v73_v22  ;;  %vm82_vm2 = vcmp.eq.f32.partialorder %v73_v22, inf  ;;  %v85_v35 = vand.u32 2147483648, %v73_v22  ;;  %vm84_vm3 = vcmp.eq.f32.partialorder %v73_v22, 0.0 }
 0x104   :  { %v72_v23 = vpop.xlane.xlu1 %71 }
 0x105   :  { %v156_v24 = vpop.eup %155  ;;  %v74_v25 = vmul.f32 0.032258064, %v72_v23 }
 0x106   :  { %v76_v26 = vmul.f32 %v156_v24, %v73_v22 }
 0x107   :  { %157 = vrsqrt.f32 %v74_v25  ;;  %vm94_vm4 = vcmp.eq.f32.partialorder %v74_v25, inf  ;;  %v97_v43 = vand.u32 2147483648, %v74_v25  ;;  %vm96_vm5 = vcmp.eq.f32.partialorder %v74_v25, 0.0 }
 0x108   :  { %v77_v27 = vmul.f32 %v156_v24, %v76_v26 }
 0x10a   :  { %v78_v28 = vmul.f32 0.5, %v77_v27 }
 0x10c   :  { %v79_v29 = vsub.f32 1.5, %v78_v28 }
 0x10d   :  { %v158_v30 = vpop.eup %157 }
 0x10e   :  { %v80_v31 = vmul.f32 %v156_v24, %v79_v29  ;;  %v88_v32 = vmul.f32 %v158_v30, %v74_v25 }
 0x110   :  { %v81_v33 = vmul.f32 %v80_v31, %v73_v22  ;;  %v89_v34 = vmul.f32 %v158_v30, %v88_v32 }
 0x112   :  { %v90_v36 = vmul.f32 0.5, %v89_v34  ;;  %v83_v37 = vsel %vm82_vm2, %v73_v22, %v81_v33 }
 0x113   :  { %v86_v38 = vsel %vm84_vm3, %v85_v35, %v83_v37 }
 0x114   :  { %v91_v39 = vsub.f32 1.5, %v90_v36  ;;  %v99_v40 = vadd.f32 1e-06, %v86_v38 }
 0x116   :  { %v92_v41 = vmul.f32 %v158_v30, %v91_v39  ;;  %159 = vrcp.f32 %v99_v40 }
 0x118   :  { %v93_v42 = vmul.f32 %v92_v41, %v74_v25 }
 0x11a   :  { %v95_v44 = vsel %vm94_vm4, %v74_v25, %v93_v42 }
 0x11b   :  { %v98_v45 = vsel %vm96_vm5, %v97_v43, %v95_v44 }
 0x11c   :  { %v160_v46 = vpop.eup %159  ;;  %v100_v47 = vadd.f32 1e-06, %v98_v45 }
 0x11d   :  { %v103_v48 = vmul.f32 %v160_v46, %v99_v40 }
 0x11e   :  { %161 = vrcp.f32 %v100_v47 }
 0x11f   :  { %v105_v49 = vsub.f32 2.0, %v103_v48 }
 0x121   :  { %v107_v50 = vmul.f32 %v160_v46, %v105_v49 }
 0x123   :  { %v109_v52 = vmul.f32 %v107_v50, %v63_v13 }
 0x124   :  { %v162_v54 = vpop.eup %161 }
 0x125   :  { %v104_v55 = vmul.f32 %v162_v54, %v100_v47  ;;  %v115_v56 = vmul.f32 %v151_v51, %v109_v52 }
 0x127   :  { %v106_v57 = vsub.f32 2.0, %v104_v55  ;;  %v121_v58 = vadd.f32 %v152_v53, %v115_v56 }
 0x129   :  { %v108_v59 = vmul.f32 %v162_v54, %v106_v57  ;;  %123 = vst.msk [vmem:[#allocation7] sm:$0xff] %vm47_vm0, %v121_v58 }
 0x12b   :  { %v110_v60 = vmul.f32 %v108_v59, %v64_v18 }
 0x12d   :  { %v116_v61 = vmul.f32 %v151_v51, %v110_v60 }
 0x12f   :  { %v122_v62 = vadd.f32 %v152_v53, %v116_v61 }
 0x131   :  { %124 = vst.msk [vmem:[#allocation7 + $0x8] sm:$0xff] %vm47_vm0, %v122_v62 }
 0x132   :  { %137 = dma.vmem_to_hbm [thread:$0]  %s130_s25, 256, %s132_s28, [#allocation4], %s242_s20, %s242_s20, %s243_s21  }
 0x133   :  { %239 = dma.done.wait [#allocation4], 256  }
 0x134   :  { %240 = vsyncadd [#allocation4], 4294967040 }
 0x135   :  { %142 = vsyncpa [#allocation3], 1 }
 0x136   :  { %143 = vsyncpa [#allocation6], 1 }
 0x137   :  { %144 = vsyncpa [#allocation4], 1 }

</bundles_post_ra>
